<compile_context>
chip_gen: v7x
topology: tpu7x:2x2x1
jax: 0.10.0
libtpu: 0.0.40
codegen_flags: <defaults>
</compile_context>

<pallas_src>
import functools

import jax
import jax.numpy as jnp
from jax import lax
from jax.experimental import pallas as pl
from jax.experimental.pallas import tpu as pltpu

EPS = 1e-5
LANE = 128


# --------------------------------------------------------------------------- #
# Kernels
# --------------------------------------------------------------------------- #
def _encode_kernel(S, x_ref, w1_ref, b1_ref, w1b_ref, b1b_ref,
                   w2a_ref, b2a_ref, gpre_ref):
    """Linear(+folded BN1) -> ReLU -> Linear -> mean/std pool -> Linear (pre-BN2).

    x_ref   : (tile_bt*S, C)   pixel rows for tile_bt pixel sets
    gpre_ref: (tile_bt, H2p)   pre-BN2 activations of mlp2's first Linear
    """
    rows = x_ref.shape[0]
    tile_bt = rows // S
    inv_s = 1.0 / float(S)
    inv_sm1 = 1.0 / float(S - 1)                       # torch.std is unbiased

    x = x_ref[...]                                                        # (rows, C)
    # mlp1 layer 1 (BN1 is folded into w1/b1 by the wrapper) + ReLU
    h = jnp.dot(x, w1_ref[...], preferred_element_type=jnp.float32) + b1_ref[...]
    h = jnp.maximum(h, 0.0)                                               # (rows, H1p)
    # mlp1 output layer
    f = jnp.dot(h, w1b_ref[...], preferred_element_type=jnp.float32) + b1b_ref[...]
    # per-pixel-set mean / unbiased std over the S axis (major-dim split reshape)
    f3 = f.reshape(tile_bt, S, f.shape[-1])                               # (tile_bt,S,D1p)
    mean = jnp.sum(f3, axis=1) * inv_s                                    # (tile_bt,D1p)
    cen = f3 - mean[:, None, :]
    std = jnp.sqrt(jnp.sum(cen * cen, axis=1) * inv_sm1)                  # (tile_bt,D1p)
    # mlp2 first Linear: single K = 2*D1p matmul on the lane-concat [mean | std]
    p = jnp.concatenate([mean, std], axis=-1)                             # (tile_bt,2*D1p)
    gpre_ref[...] = (jnp.dot(p, w2a_ref[...], preferred_element_type=jnp.float32)
                     + b2a_ref[...])


def _head_kernel(g_ref, sc2_ref, sh2_ref, w2b_ref, b2b_ref, o_ref):
    """Folded BN2 -> ReLU -> final Linear."""
    g = jnp.maximum(g_ref[...] * sc2_ref[...] + sh2_ref[...], 0.0)
    o_ref[...] = (jnp.dot(g, w2b_ref[...], preferred_element_type=jnp.float32)
                  + b2b_ref[...])


# --------------------------------------------------------------------------- #
# Wrapper helpers
# --------------------------------------------------------------------------- #
def _round_up(n, m=LANE):
    return ((n + m - 1) // m) * m


def _pad2(a, rows, cols):
    r, c = a.shape
    return jnp.pad(a.astype(jnp.float32), ((0, rows - r), (0, cols - c)))


def _choose_tile(BT, rows_per_item, target_rows=2048):
    """Largest multiple-of-8 divisor of BT with <= target_rows rows per tile and
    (when possible) >= 2 tiles, so the parallel grid axis can use both v7x cores.
    Falls back to a single full-extent tile (always tiling-legal)."""
    target_items = max(1, target_rows // max(rows_per_item, 1))
    best = None
    hi = min(target_items, BT // 2)
    for d in range(8, hi + 1, 8):
        if BT % d == 0:
            best = d
    return best if best is not None else BT


def _vmem_limit_bytes():
    """Generation-aware VMEM budget (<=3/4 of physical, clamped to [32, 96] MiB)."""
    try:
        info = pltpu.get_tpu_info()
        cap = int(getattr(info, "vmem_capacity_bytes", 64 * 2 ** 20))
    except Exception:
        cap = 64 * 2 ** 20
    return int(min(96 * 2 ** 20, max(32 * 2 ** 20, (cap * 3) // 4)))


# --------------------------------------------------------------------------- #
# Forward pass
# --------------------------------------------------------------------------- #
def pixel_set_encoder(x, params, *, pooling="mean_std"):
    """x: (B, T, C, S) float32.  Returns (B, T, D2)."""
    assert pooling == "mean_std"
    B, T, C, S = x.shape
    assert S >= 2, "unbiased std pooling needs at least 2 pixels per set"
    BT = B * T
    N1 = BT * S
    (w1a, b1a, g1, be1, w1b, b1b, w2a, b2a, g2, be2, w2b, b2b) = params
    H1 = w1a.shape[1]; D1 = w1b.shape[1]; H2 = w2a.shape[1]; D2 = w2b.shape[1]
    H1p, D1p, H2p, D2p = (_round_up(d) for d in (H1, D1, H2, D2))

    # --- zero-pad feature dims to 128 lanes (padded cols stay identically zero) ---
    w1a_p = _pad2(w1a, C, H1p);   b1a_p = _pad2(b1a, 1, H1p)
    g1_p = _pad2(g1, 1, H1p);     be1_p = _pad2(be1, 1, H1p)
    w1b_p = _pad2(w1b, H1p, D1p); b1b_p = _pad2(b1b, 1, D1p)
    # mlp2 first Linear: rows laid out as [mean block | std block], each padded to D1p,
    # matching the in-kernel lane-concat [mean | std] operand (single K=2*D1p matmul).
    w2a_p = jnp.concatenate([_pad2(w2a[:D1], D1p, H2p),
                             _pad2(w2a[D1:], D1p, H2p)], axis=0)          # (2*D1p,H2p)
    b2a_p = _pad2(b2a, 1, H2p)
    g2_p = _pad2(g2, 1, H2p);     be2_p = _pad2(be2, 1, H2p)
    w2b_p = _pad2(w2b, H2p, D2p); b2b_p = _pad2(b2b, 1, D2p)

    # --- pixel rows exactly as PyTorch sees them: one XLA transpose pass ---
    x2 = jnp.transpose(x, (0, 1, 3, 2)).reshape(N1, C).astype(jnp.float32)

    # --- BN1 batch statistics from C x C Gram statistics (no extra matmul pass) ---
    # h = x @ W + b  =>  E[h] = E[x] @ W + b,  Var[h]_j = diag(W^T Cov[x] W)_j.
    sum_x = jnp.sum(x2, axis=0, keepdims=True)                            # (1, C)
    gram = jnp.einsum('nc,nd->cd', x2, x2)                                # (C, C)
    mu_x = sum_x / N1
    cov_x = gram / N1 - mu_x.T @ mu_x                                     # (C, C)
    mu1 = mu_x @ w1a_p + b1a_p                                            # (1, H1p)
    var1 = jnp.maximum(jnp.einsum('cd,ch,dh->h', cov_x, w1a_p, w1a_p), 0.0)[None, :]
    scale1 = g1_p * lax.rsqrt(var1 + EPS)                                 # folded BN1
    shift1 = be1_p - mu1 * scale1
    w1_f = w1a_p * scale1                                                 # fold into Linear
    b1_f = b1a_p * scale1 + shift1

    cparams = pltpu.CompilerParams(
        dimension_semantics=("parallel",),                 # megacore-shardable on v7x
        vmem_limit_bytes=_vmem_limit_bytes())

    def full(a):
        shp = a.shape
        return pl.BlockSpec(shp, lambda i: (0,) * len(shp))

    # ---------------- call 1: mlp1 -> mean/std pool -> mlp2 first Linear ----------
    tile_bt = _choose_tile(BT, S)                          # pixel sets per grid step
    num_tiles = BT // tile_bt
    tile_rows = tile_bt * S
    cost1 = pl.CostEstimate(
        flops=2 * N1 * (C * H1p + H1p * D1p) + 4 * BT * D1p * H2p + 8 * N1 * D1p,
        transcendentals=BT * D1p,
        bytes_accessed=4 * (N1 * C + BT * H2p + C * H1p + H1p * D1p + 2 * D1p * H2p))
    gpre = pl.pallas_call(
        functools.partial(_encode_kernel, S),
        grid=(num_tiles,),
        in_specs=[pl.BlockSpec((tile_rows, C), lambda i: (i, 0)),
                  full(w1_f), full(b1_f), full(w1b_p), full(b1b_p),
                  full(w2a_p), full(b2a_p)],
        out_specs=pl.BlockSpec((tile_bt, H2p), lambda i: (i, 0)),
        out_shape=jax.ShapeDtypeStruct((BT, H2p), jnp.float32),
        compiler_params=cparams,
        cost_estimate=cost1,
    )(x2, w1_f, b1_f, w1b_p, b1b_p, w2a_p, b2a_p)

    # --- BN2 batch statistics: robust two-pass over the small gpre activations ---
    mu2 = jnp.mean(gpre, axis=0, keepdims=True)
    var2 = jnp.mean((gpre - mu2) ** 2, axis=0, keepdims=True)
    scale2 = g2_p * lax.rsqrt(var2 + EPS)                                 # folded BN2
    shift2 = be2_p - mu2 * scale2

    # ---------------- call 2: BN2(folded) -> ReLU -> final Linear -----------------
    tile_h = _choose_tile(BT, 1, target_rows=4096)
    num_tiles_h = BT // tile_h
    cost2 = pl.CostEstimate(
        flops=2 * BT * H2p * D2p + 4 * BT * H2p,
        transcendentals=0,
        bytes_accessed=4 * (BT * H2p + BT * D2p + H2p * D2p))
    out_p = pl.pallas_call(
        _head_kernel,
        grid=(num_tiles_h,),
        in_specs=[pl.BlockSpec((tile_h, H2p), lambda i: (i, 0)),
                  full(scale2), full(shift2), full(w2b_p), full(b2b_p)],
        out_specs=pl.BlockSpec((tile_h, D2p), lambda i: (i, 0)),
        out_shape=jax.ShapeDtypeStruct((BT, D2p), jnp.float32),
        compiler_params=cparams,
        cost_estimate=cost2,
    )(gpre, scale2, shift2, w2b_p, b2b_p)

    return out_p[:, :D2].reshape(B, T, D2)


# --------------------------------------------------------------------------- #
# Parameters and pure-JAX reference
# --------------------------------------------------------------------------- #
def init_params(key, C, mlp1_dims, mlp2_dims):
    """Deterministic synthetic parameters (training-mode BN => no running stats)."""
    H1, D1 = mlp1_dims
    H2, D2 = mlp2_dims
    ks = jax.random.split(key, 12)
    n = lambda k, shp, s=0.1: (s * jax.random.normal(k, shp)).astype(jnp.float32)
    w1a = n(ks[0], (C, H1));        b1a = n(ks[1], (1, H1), 0.05)
    g1 = 1.0 + n(ks[2], (1, H1), 0.05); be1 = n(ks[3], (1, H1), 0.05)
    w1b = n(ks[4], (H1, D1));       b1b = n(ks[5], (1, D1), 0.05)
    w2a = n(ks[6], (2 * D1, H2));   b2a = n(ks[7], (1, H2), 0.05)
    g2 = 1.0 + n(ks[8], (1, H2), 0.05); be2 = n(ks[9], (1, H2), 0.05)
    w2b = n(ks[10], (H2, D2));      b2b = n(ks[11], (1, D2), 0.05)
    return (w1a, b1a, g1, be1, w1b, b1b, w2a, b2a, g2, be2, w2b, b2b)


def reference(x, params):
    """Pure-JAX reference of the PyTorch forward (training-mode BN)."""
    (w1a, b1a, g1, be1, w1b, b1b, w2a, b2a, g2, be2, w2b, b2b) = params
    B, T, C, S = x.shape
    xr = jnp.transpose(x, (0, 1, 3, 2)).reshape(B * T * S, C)
    h = xr @ w1a + b1a
    mu = h.mean(0, keepdims=True)
    var = ((h - mu) ** 2).mean(0, keepdims=True)
    h = jnp.maximum((h - mu) / jnp.sqrt(var + EPS) * g1 + be1, 0.0)
    f = h @ w1b + b1b
    f3 = f.reshape(B * T, S, -1)
    m = f3.mean(1)
    s = jnp.sqrt(((f3 - m[:, None, :]) ** 2).sum(1) / (S - 1))
    p = jnp.concatenate([m, s], axis=-1)
    g = p @ w2a + b2a
    mu2 = g.mean(0, keepdims=True)
    var2 = ((g - mu2) ** 2).mean(0, keepdims=True)
    g = jnp.maximum((g - mu2) / jnp.sqrt(var2 + EPS) * g2 + be2, 0.0)
    o = g @ w2b + b2b
    return o.reshape(B, T, -1)


# --------------------------------------------------------------------------- #
# Test
# --------------------------------------------------------------------------- #
if __name__ == "__main__":
    B, T, C, S = 2, 8, 4, 16          # BT=16 -> tile_bt=8 -> 2-tile grid exercised
    mlp1_dims = [32, 64]              # H1=32, D1=64 (mlp1_output_dim)
    mlp2_dims = [64, 32]              # H2=64, D2=32

    key = jax.random.PRNGKey(0)
    kx, kp = jax.random.split(key)
    x = jax.random.normal(kx, (B, T, C, S), dtype=jnp.float32)
    params = init_params(kp, C, mlp1_dims, mlp2_dims)

    fwd = jax.jit(pixel_set_encoder)
    out = jax.block_until_ready(fwd(x, params))

    ref = reference(x, params)
    assert out.shape == (B, T, mlp2_dims[-1])
    assert bool(jnp.all(jnp.isfinite(out)))
    assert jnp.allclose(out, ref, atol=1e-4, rtol=1e-4), \
        float(jnp.max(jnp.abs(out - ref)))

    # TODO(synk): BatchNorm running-stat buffer updates (a training-time side
    # effect of the PyTorch module) are not modeled; only the returned tensor is.
    print("KERNEL_OK")
</pallas_src>

<mosaic_0001>
module attributes {stable_mosaic.version = 11 : i64} {
  func.func @_encode_kernel(%arg0: i32, %arg1: memref<128x4xf32, #tpu.memory_space<vmem>>, %arg2: memref<4x128xf32, #tpu.memory_space<vmem>>, %arg3: memref<1x128xf32, #tpu.memory_space<vmem>>, %arg4: memref<128x128xf32, #tpu.memory_space<vmem>>, %arg5: memref<1x128xf32, #tpu.memory_space<vmem>>, %arg6: memref<256x128xf32, #tpu.memory_space<vmem>>, %arg7: memref<1x128xf32, #tpu.memory_space<vmem>>, %arg8: memref<8x128xf32, #tpu.memory_space<vmem>>) attributes {dimension_semantics = [#tpu.dimension_semantics<parallel>], iteration_bounds = array<i64: 2>, scalar_prefetch = 0 : i64, scratch_operands = 0 : i64, tpu.core_type = #tpu.core_type<tc>, window_params = [{transform_indices = @transform_0, window_bounds = array<i64: 128, 4>}, {pipeline_mode = #tpu.pipeline_mode<synchronous>, transform_indices = @transform_1, window_bounds = array<i64: 4, 128>}, {pipeline_mode = #tpu.pipeline_mode<synchronous>, transform_indices = @transform_2, window_bounds = array<i64: 1, 128>}, {pipeline_mode = #tpu.pipeline_mode<synchronous>, transform_indices = @transform_3, window_bounds = array<i64: 128, 128>}, {pipeline_mode = #tpu.pipeline_mode<synchronous>, transform_indices = @transform_4, window_bounds = array<i64: 1, 128>}, {pipeline_mode = #tpu.pipeline_mode<synchronous>, transform_indices = @transform_5, window_bounds = array<i64: 256, 128>}, {pipeline_mode = #tpu.pipeline_mode<synchronous>, transform_indices = @transform_6, window_bounds = array<i64: 1, 128>}, {transform_indices = @transform_7, window_bounds = array<i64: 8, 128>}]} {
    %c0 = arith.constant 0 : index
    %c0_0 = arith.constant 0 : index
    %0 = vector.load %arg1[%c0, %c0_0] : memref<128x4xf32, #tpu.memory_space<vmem>>, vector<128x4xf32>
    %c0_1 = arith.constant 0 : index
    %c0_2 = arith.constant 0 : index
    %1 = vector.load %arg2[%c0_1, %c0_2] : memref<4x128xf32, #tpu.memory_space<vmem>>, vector<4x128xf32>
    %cst = arith.constant dense<0.000000e+00> : vector<128x128xf32>
    %2 = tpu.matmul %0, %1, %cst {dimension_numbers = #tpu.dot_dimension_numbers<[1], [0], [0], [1], [0, 0, 1, 1], [], []>} : vector<128x4xf32>, vector<4x128xf32>, vector<128x128xf32> -> vector<128x128xf32>
    %c0_3 = arith.constant 0 : index
    %c0_4 = arith.constant 0 : index
    %3 = vector.load %arg3[%c0_3, %c0_4] : memref<1x128xf32, #tpu.memory_space<vmem>>, vector<1x128xf32>
    %4 = vector.broadcast %3 : vector<1x128xf32> to vector<128x128xf32>
    %5 = arith.addf %2, %4 : vector<128x128xf32>
    %cst_5 = arith.constant 0.000000e+00 : f32
    %6 = vector.broadcast %cst_5 : f32 to vector<128x128xf32>
    %7 = arith.maximumf %5, %6 : vector<128x128xf32>
    %c0_6 = arith.constant 0 : index
    %c0_7 = arith.constant 0 : index
    %8 = vector.load %arg4[%c0_6, %c0_7] : memref<128x128xf32, #tpu.memory_space<vmem>>, vector<128x128xf32>
    %cst_8 = arith.constant dense<0.000000e+00> : vector<128x128xf32>
    %9 = tpu.matmul %7, %8, %cst_8 {dimension_numbers = #tpu.dot_dimension_numbers<[1], [0], [0], [1], [0, 0, 1, 1], [], []>} : vector<128x128xf32>, vector<128x128xf32>, vector<128x128xf32> -> vector<128x128xf32>
    %c0_9 = arith.constant 0 : index
    %c0_10 = arith.constant 0 : index
    %10 = vector.load %arg5[%c0_9, %c0_10] : memref<1x128xf32, #tpu.memory_space<vmem>>, vector<1x128xf32>
    %11 = vector.broadcast %10 : vector<1x128xf32> to vector<128x128xf32>
    %12 = arith.addf %9, %11 : vector<128x128xf32>
    %13 = vector.shape_cast %12 : vector<128x128xf32> to vector<8x16x128xf32>
    %cst_11 = arith.constant dense<0.000000e+00> : vector<8x128xf32>
    %14 = vector.multi_reduction <add>, %13, %cst_11 [1] : vector<8x16x128xf32> to vector<8x128xf32>
    %cst_12 = arith.constant 6.250000e-02 : f32
    %15 = vector.broadcast %cst_12 : f32 to vector<8x128xf32>
    %16 = arith.mulf %14, %15 : vector<8x128xf32>
    %17 = vector.shape_cast %16 : vector<8x128xf32> to vector<8x1x128xf32>
    %18 = vector.broadcast %17 : vector<8x1x128xf32> to vector<8x16x128xf32>
    %19 = arith.subf %13, %18 : vector<8x16x128xf32>
    %20 = arith.mulf %19, %19 : vector<8x16x128xf32>
    %cst_13 = arith.constant dense<0.000000e+00> : vector<8x128xf32>
    %21 = vector.multi_reduction <add>, %20, %cst_13 [1] : vector<8x16x128xf32> to vector<8x128xf32>
    %cst_14 = arith.constant 0.0666666701 : f32
    %22 = vector.broadcast %cst_14 : f32 to vector<8x128xf32>
    %23 = arith.mulf %21, %22 : vector<8x128xf32>
    %24 = math.sqrt %23 : vector<8x128xf32>
    %25 = tpu.concatenate %16, %24 in 1 : vector<8x128xf32>, vector<8x128xf32> -> vector<8x256xf32>
    %c0_15 = arith.constant 0 : index
    %c0_16 = arith.constant 0 : index
    %26 = vector.load %arg6[%c0_15, %c0_16] : memref<256x128xf32, #tpu.memory_space<vmem>>, vector<256x128xf32>
    %cst_17 = arith.constant dense<0.000000e+00> : vector<8x128xf32>
    %27 = tpu.matmul %25, %26, %cst_17 {dimension_numbers = #tpu.dot_dimension_numbers<[1], [0], [0], [1], [0, 0, 1, 1], [], []>} : vector<8x256xf32>, vector<256x128xf32>, vector<8x128xf32> -> vector<8x128xf32>
    %c0_18 = arith.constant 0 : index
    %c0_19 = arith.constant 0 : index
    %28 = vector.load %arg7[%c0_18, %c0_19] : memref<1x128xf32, #tpu.memory_space<vmem>>, vector<1x128xf32>
    %29 = vector.broadcast %28 : vector<1x128xf32> to vector<8x128xf32>
    %30 = arith.addf %27, %29 : vector<8x128xf32>
    %c0_20 = arith.constant 0 : index
    %c0_21 = arith.constant 0 : index
    %31 = vector.load %arg8[%c0_20, %c0_21] : memref<8x128xf32, #tpu.memory_space<vmem>>, vector<8x128xf32>
    tpu.vector_store %arg8[%c0_20, %c0_21], %30 {strides = array<i32>} : memref<8x128xf32, #tpu.memory_space<vmem>>, vector<8x128xf32>,
    return
  }
  func.func @transform_0(%arg0: i32) -> (i32, i32) {
    %c0_i32 = arith.constant 0 : i32
    %c0_i32_0 = arith.constant 0 : i32
    return %arg0, %c0_i32 : i32, i32
  }
  func.func @transform_1(%arg0: i32) -> (i32, i32) {
    %c0_i32 = arith.constant 0 : i32
    %c0_i32_0 = arith.constant 0 : i32
    %c0_i32_1 = arith.constant 0 : i32
    return %c0_i32, %c0_i32_0 : i32, i32
  }
  func.func @transform_2(%arg0: i32) -> (i32, i32) {
    %c0_i32 = arith.constant 0 : i32
    %c0_i32_0 = arith.constant 0 : i32
    %c0_i32_1 = arith.constant 0 : i32
    return %c0_i32, %c0_i32_0 : i32, i32
  }
  func.func @transform_3(%arg0: i32) -> (i32, i32) {
    %c0_i32 = arith.constant 0 : i32
    %c0_i32_0 = arith.constant 0 : i32
    %c0_i32_1 = arith.constant 0 : i32
    return %c0_i32, %c0_i32_0 : i32, i32
  }
  func.func @transform_4(%arg0: i32) -> (i32, i32) {
    %c0_i32 = arith.constant 0 : i32
    %c0_i32_0 = arith.constant 0 : i32
    %c0_i32_1 = arith.constant 0 : i32
    return %c0_i32, %c0_i32_0 : i32, i32
  }
  func.func @transform_5(%arg0: i32) -> (i32, i32) {
    %c0_i32 = arith.constant 0 : i32
    %c0_i32_0 = arith.constant 0 : i32
    %c0_i32_1 = arith.constant 0 : i32
    return %c0_i32, %c0_i32_0 : i32, i32
  }
  func.func @transform_6(%arg0: i32) -> (i32, i32) {
    %c0_i32 = arith.constant 0 : i32
    %c0_i32_0 = arith.constant 0 : i32
    %c0_i32_1 = arith.constant 0 : i32
    return %c0_i32, %c0_i32_0 : i32, i32
  }
  func.func @transform_7(%arg0: i32) -> (i32, i32) {
    %c0_i32 = arith.constant 0 : i32
    %c0_i32_0 = arith.constant 0 : i32
    return %arg0, %c0_i32 : i32, i32
  }
}

module attributes {stable_mosaic.version = 11 : i64} {
  func.func @_head_kernel(%arg0: i32, %arg1: memref<8x128xf32, #tpu.memory_space<vmem>>, %arg2: memref<1x128xf32, #tpu.memory_space<vmem>>, %arg3: memref<1x128xf32, #tpu.memory_space<vmem>>, %arg4: memref<128x128xf32, #tpu.memory_space<vmem>>, %arg5: memref<1x128xf32, #tpu.memory_space<vmem>>, %arg6: memref<8x128xf32, #tpu.memory_space<vmem>>) attributes {dimension_semantics = [#tpu.dimension_semantics<parallel>], iteration_bounds = array<i64: 2>, scalar_prefetch = 0 : i64, scratch_operands = 0 : i64, tpu.core_type = #tpu.core_type<tc>, window_params = [{transform_indices = @transform_0, window_bounds = array<i64: 8, 128>}, {pipeline_mode = #tpu.pipeline_mode<synchronous>, transform_indices = @transform_1, window_bounds = array<i64: 1, 128>}, {pipeline_mode = #tpu.pipeline_mode<synchronous>, transform_indices = @transform_2, window_bounds = array<i64: 1, 128>}, {pipeline_mode = #tpu.pipeline_mode<synchronous>, transform_indices = @transform_3, window_bounds = array<i64: 128, 128>}, {pipeline_mode = #tpu.pipeline_mode<synchronous>, transform_indices = @transform_4, window_bounds = array<i64: 1, 128>}, {transform_indices = @transform_5, window_bounds = array<i64: 8, 128>}]} {
    %c0 = arith.constant 0 : index
    %c0_0 = arith.constant 0 : index
    %0 = vector.load %arg1[%c0, %c0_0] : memref<8x128xf32, #tpu.memory_space<vmem>>, vector<8x128xf32>
    %c0_1 = arith.constant 0 : index
    %c0_2 = arith.constant 0 : index
    %1 = vector.load %arg2[%c0_1, %c0_2] : memref<1x128xf32, #tpu.memory_space<vmem>>, vector<1x128xf32>
    %2 = vector.broadcast %1 : vector<1x128xf32> to vector<8x128xf32>
    %3 = arith.mulf %0, %2 : vector<8x128xf32>
    %c0_3 = arith.constant 0 : index
    %c0_4 = arith.constant 0 : index
    %4 = vector.load %arg3[%c0_3, %c0_4] : memref<1x128xf32, #tpu.memory_space<vmem>>, vector<1x128xf32>
    %5 = vector.broadcast %4 : vector<1x128xf32> to vector<8x128xf32>
    %6 = arith.addf %3, %5 : vector<8x128xf32>
    %cst = arith.constant 0.000000e+00 : f32
    %7 = vector.broadcast %cst : f32 to vector<8x128xf32>
    %8 = arith.maximumf %6, %7 : vector<8x128xf32>
    %c0_5 = arith.constant 0 : index
    %c0_6 = arith.constant 0 : index
    %9 = vector.load %arg4[%c0_5, %c0_6] : memref<128x128xf32, #tpu.memory_space<vmem>>, vector<128x128xf32>
    %cst_7 = arith.constant dense<0.000000e+00> : vector<8x128xf32>
    %10 = tpu.matmul %8, %9, %cst_7 {dimension_numbers = #tpu.dot_dimension_numbers<[1], [0], [0], [1], [0, 0, 1, 1], [], []>} : vector<8x128xf32>, vector<128x128xf32>, vector<8x128xf32> -> vector<8x128xf32>
    %c0_8 = arith.constant 0 : index
    %c0_9 = arith.constant 0 : index
    %11 = vector.load %arg5[%c0_8, %c0_9] : memref<1x128xf32, #tpu.memory_space<vmem>>, vector<1x128xf32>
    %12 = vector.broadcast %11 : vector<1x128xf32> to vector<8x128xf32>
    %13 = arith.addf %10, %12 : vector<8x128xf32>
    %c0_10 = arith.constant 0 : index
    %c0_11 = arith.constant 0 : index
    %14 = vector.load %arg6[%c0_10, %c0_11] : memref<8x128xf32, #tpu.memory_space<vmem>>, vector<8x128xf32>
    tpu.vector_store %arg6[%c0_10, %c0_11], %13 {strides = array<i32>} : memref<8x128xf32, #tpu.memory_space<vmem>>, vector<8x128xf32>,
    return
  }
  func.func @transform_0(%arg0: i32) -> (i32, i32) {
    %c0_i32 = arith.constant 0 : i32
    %c0_i32_0 = arith.constant 0 : i32
    return %arg0, %c0_i32 : i32, i32
  }
  func.func @transform_1(%arg0: i32) -> (i32, i32) {
    %c0_i32 = arith.constant 0 : i32
    %c0_i32_0 = arith.constant 0 : i32
    %c0_i32_1 = arith.constant 0 : i32
    return %c0_i32, %c0_i32_0 : i32, i32
  }
  func.func @transform_2(%arg0: i32) -> (i32, i32) {
    %c0_i32 = arith.constant 0 : i32
    %c0_i32_0 = arith.constant 0 : i32
    %c0_i32_1 = arith.constant 0 : i32
    return %c0_i32, %c0_i32_0 : i32, i32
  }
  func.func @transform_3(%arg0: i32) -> (i32, i32) {
    %c0_i32 = arith.constant 0 : i32
    %c0_i32_0 = arith.constant 0 : i32
    %c0_i32_1 = arith.constant 0 : i32
    return %c0_i32, %c0_i32_0 : i32, i32
  }
  func.func @transform_4(%arg0: i32) -> (i32, i32) {
    %c0_i32 = arith.constant 0 : i32
    %c0_i32_0 = arith.constant 0 : i32
    %c0_i32_1 = arith.constant 0 : i32
    return %c0_i32, %c0_i32_0 : i32, i32
  }
  func.func @transform_5(%arg0: i32) -> (i32, i32) {
    %c0_i32 = arith.constant 0 : i32
    %c0_i32_0 = arith.constant 0 : i32
    return %arg0, %c0_i32 : i32, i32
  }
}

</mosaic_0001>

<bundles_post_ra>
// kernel: pixel_set_encoder.3
= control target key start
LH: loop header
LB: loop body
LE: loop exit
PB: predicated region body
PF: predicated region fallthrough
CT: control target
= control target key end

     0   :  { %s525_s18 = smov 0   ;;  %s606_s0 = inlined_call_operand.vmem [shape: f32[16,128], index: 0, kind: input, shape index: {}]   ;;  %s607_s1 = inlined_call_operand.vmem [shape: f32[1,128], index: 1, kind: input, shape index: {}]   ;;  %s608_s2 = inlined_call_operand.vmem [shape: f32[1,128], index: 2, kind: input, shape index: {}]   ;;  %s609_s3 = inlined_call_operand.vmem [shape: f32[128,128], index: 3, kind: input, shape index: {}]   ;;  %s610_s4 = inlined_call_operand.vmem [shape: f32[1,128], index: 4, kind: input, shape index: {}]   ;;  %s611_s5 = inlined_call_operand.vmem [shape: f32[16,128], index: 5, kind: output, shape index: {}]  }
   0x1 LB: > { %s385_s19 = sadd.s32 4294967295, %s490_s18   ;;  %p389_p0 = scmp.ge.s32.totalorder %s490_s18, 1  ;;  %s490_s18 = sphi %s525_s18, %s15_s18  }
   0x2   : > { %p186_p1 = scmp.lt.s32.totalorder %s490_s18, 3 }
   0x4   : > { %p187_p2 = pnand %p389_p0, %p186_p1 }
   0x5   : > { %v238_v0 = vld [vmem:[%s609_s3] sm:$0xff] (!%p187_p2)  ;;  %v239_v1 = vld [vmem:[%s609_s3 + $0x8] sm:$0xff] (!%p187_p2)  ;;  %v240_v2 = vld [vmem:[%s609_s3 + $0x10] sm:$0xff] (!%p187_p2)  ;;  %v492_v3 = vmov (!%p187_p2), 0.0|0.0   ;;  %vm493_vm0 = vmmov (!%p187_p2), 0   ;;  %v494_v6 = vmov (!%p187_p2), 0.0  }
   0x6   : > { %190 = sbr.rel (%p187_p2) target bundleno = 254 (0xfe), region = 40  ;;  %449 = vmatprep.subr.bf16.mxu0 (!%p187_p2), %v492_v3  ;;  %v450_v4 = vpack.c.bf16 (!%p187_p2), %v239_v1, %v238_v0  ;;  %v241_v5 = vld [vmem:[%s609_s3 + $0x18] sm:$0xff] (!%p187_p2)  ;;  %446 = vmatprep.mubr.msk.f32.mxu0 (!%p187_p2), %vm493_vm0, %v494_v6  ;;  %v242_v8 = vld [vmem:[%s609_s3 + $0x20] sm:$0xff] (!%p187_p2)  ;;  %v243_v9 = vld [vmem:[%s609_s3 + $0x28] sm:$0xff] (!%p187_p2)  ;;  %p212_p3 = scmp.lt.s32.totalorder (!%p187_p2), %s385_s19, 1 }
   0x7   : > { %v453_v7 = vpack.c.bf16 (!%p187_p2), %v241_v5, %v240_v2  ;;  %v456_v10 = vpack.c.bf16 (!%p187_p2), %v243_v9, %v242_v8  ;;  %v244_v11 = vld [vmem:[%s609_s3 + $0x30] sm:$0xff] (!%p187_p2)  ;;  %v245_v12 = vld [vmem:[%s609_s3 + $0x38] sm:$0xff] (!%p187_p2)  ;;  %v246_v14 = vld [vmem:[%s609_s3 + $0x40] sm:$0xff] (!%p187_p2) }
   0x8   : > { %451 = vmatpush3.bf16.msra.mxu0 (!%p187_p2), %v450_v4  ;;  %v459_v13 = vpack.c.bf16 (!%p187_p2), %v245_v12, %v244_v11  ;;  %v247_v15 = vld [vmem:[%s609_s3 + $0x48] sm:$0xff] (!%p187_p2)  ;;  %v248_v17 = vld [vmem:[%s609_s3 + $0x50] sm:$0xff] (!%p187_p2)  ;;  %v249_v18 = vld [vmem:[%s609_s3 + $0x58] sm:$0xff] (!%p187_p2) }
   0x9   : > { %452 = vmatprep.subr.bf16.mxu0 (!%p187_p2), %v492_v3  ;;  %v462_v16 = vpack.c.bf16 (!%p187_p2), %v247_v15, %v246_v14  ;;  %v465_v19 = vpack.c.bf16 (!%p187_p2), %v249_v18, %v248_v17  ;;  %v392_v21 = vld [vmem:[%s607_s1] ss:$0 sm:$0xff] (!%p187_p2)  ;;  %v251_v23 = vld [vmem:[%s609_s3 + $0x68] sm:$0xff] (!%p187_p2)  ;;  %v252_v27 = vld [vmem:[%s609_s3 + $0x70] sm:$0xff] (!%p187_p2) }
   0xa   : > { %v250_v22 = vld [vmem:[%s609_s3 + $0x60] sm:$0xff] (!%p187_p2)  ;;  %v253_v28 = vld [vmem:[%s609_s3 + $0x78] sm:$0xff] (!%p187_p2) }
   0xb   : > { %v468_v25 = vpack.c.bf16 (!%p187_p2), %v251_v23, %v250_v22  ;;  %v393_v26 = vld [vmem:[%s608_s2] ss:$0 sm:$0xff] (!%p187_p2)  ;;  %v471_v30 = vpack.c.bf16 (!%p187_p2), %v253_v28, %v252_v27 }
   0xc   : > { %454 = vmatpush3.bf16.msra.mxu0 (!%p187_p2), %v453_v7  ;;  %v394_v32 = vld [vmem:[%s610_s4] ss:$0 sm:$0xff] (!%p187_p2) }
   0xd   : > { %455 = vmatprep.subr.bf16.mxu0 %v492_v3  ;;  %s613_s19 = smov (!%p212_p3, %s385_s19), 1 }
   0xe   : > { %s390_s15 = sshll.u32 %s613_s19, 3 }
   0xf   : > { %s215_s24 = scalar_lea.vmem %s606_s0, %s390_s15  ;;  %s219_s17 = scalar_lea.vmem %s611_s5, %s390_s15 }
  0x10   : > { %457 = vmatpush3.bf16.msra.mxu0 %v456_v10  ;;  %v220_v20 = vld [vmem:[%s215_s24] sm:$0xff] }
  0x11   : > { %458 = vmatprep.subr.bf16.mxu0 %v492_v3  ;;  %v228_v24 = vmul.f32 %v392_v21, %v220_v20 }
  0x13   : > { %v236_v29 = vadd.f32 %v393_v26, %v228_v24 }
  0x14   : > { %460 = vmatpush3.bf16.msra.mxu0 %v459_v13 }
  0x15   : > { %461 = vmatprep.subr.bf16.mxu0 %v492_v3  ;;  %v237_v31 = vmax.f32 %v236_v29, 0.0 }
  0x18   : > { %463 = vmatpush3.bf16.msra.mxu0 %v462_v16 }
  0x19   : > { %464 = vmatprep.subr.bf16.mxu0 %v492_v3 }
  0x1c   : > { %466 = vmatpush3.bf16.msra.mxu0 %v465_v19 }
  0x1d   : > { %467 = vmatprep.subr.bf16.mxu0 %v492_v3 }
  0x20   : > { %469 = vmatpush3.bf16.msra.mxu0 %v468_v25 }
  0x21   : > { %470 = vmatprep.subr.bf16.mxu0 %v492_v3 }
  0x24   : > { %472 = vmatpush3.bf16.msra.mxu0 %v471_v30 }
  0x27   : > { %447 = vmatmul.mubr.f32.vlgmr.msra.gmra.mrb[0].mxu0 %v237_v31 }
  0xfa   : > { %v327_v33 = vpop.f32.mrb[0].mxu0 }
  0xfb   : > { %v328_v34 = vadd.f32 %v394_v32, %v327_v33  ;;  %v448_v35 = vpop.f32.mrb[1].mxu0 }
  0xfd   : > { %331 = vst [vmem:[%s219_s17] sm:$0xff] %v328_v34 }
  0xfe PF: > { %s15_s18 = sadd.s32 1, %s490_s18  }
  0xff   : > { %p12_p4 = scmp.ge.s32.totalorder %s15_s18, 4  }
 0x101   :  { %14 = sbr.rel (!%p12_p4) target bundleno = 1 (0x1), region = 70 }

// kernel: pixel_set_encoder.2
= control target key start
LH: loop header
LB: loop body
LE: loop exit
PB: predicated region body
PF: predicated region fallthrough
CT: control target
= control target key end

     0   :  { %s1435_s24 = smov 0   ;;  %s1779_s0 = inlined_call_operand.vmem [shape: f32[256,4], index: 0, kind: input, shape index: {}]   ;;  %s1780_s1 = inlined_call_operand.vmem [shape: f32[4,128], index: 1, kind: input, shape index: {}]   ;;  %s1781_s2 = inlined_call_operand.vmem [shape: f32[1,128], index: 2, kind: input, shape index: {}]   ;;  %s1782_s3 = inlined_call_operand.vmem [shape: f32[128,128], index: 3, kind: input, shape index: {}]   ;;  %s1783_s4 = inlined_call_operand.vmem [shape: f32[1,128], index: 4, kind: input, shape index: {}]   ;;  %s1784_s5 = inlined_call_operand.vmem [shape: f32[256,128], index: 5, kind: input, shape index: {}]   ;;  %s1785_s6 = inlined_call_operand.vmem [shape: f32[1,128], index: 6, kind: input, shape index: {}]   ;;  %s1786_s7 = inlined_call_operand.vmem [shape: f32[16,128], index: 7, kind: output, shape index: {}]  }
   0x1 LB: > { %s1441_s25 = sadd.s32 4294967295, %s1393_s24   ;;  %p1107_p0 = scmp.ge.s32.totalorder %s1393_s24, 1  ;;  %s1393_s24 = sphi %s1435_s24, %s17_s24  }
   0x2   : > { %p238_p1 = scmp.lt.s32.totalorder %s1393_s24, 3 }
   0x4   : > { %p239_p2 = pnand %p1107_p0, %p238_p1 }
   0x5   : > { %v295_v0 = vld [vmem:[%s1780_s1] sm:$0xf] (!%p239_p2)  ;;  %vm352_vm0 = vcmask (!%p239_p2), 1043456   ;;  %s1108_s28 = sshll.u32 (!%p239_p2), %s1441_s25, 4  ;;  %v518_v2 = vld [vmem:[%s1782_s3 + $0x8] sm:$0xff] (!%p239_p2)  ;;  %v519_v3 = vld [vmem:[%s1782_s3 + $0x10] sm:$0xff] (!%p239_p2) }
   0x6   : > { %242 = sbr.rel (%p239_p2) target bundleno = 762 (0x2fa), region = 48  ;;  %v517_v1 = vld [vmem:[%s1782_s3] sm:$0xff] (!%p239_p2)  ;;  %1217 = vmatprep.subr.msk.mxu0 (!%p239_p2), %vm352_vm0, %v295_v0  ;;  %p270_p3 = scmp.lt.s32.totalorder (!%p239_p2), %s1108_s28, 31  ;;  %v520_v4 = vld [vmem:[%s1782_s3 + $0x18] sm:$0xff] (!%p239_p2)  ;;  %v522_v8 = vld [vmem:[%s1782_s3 + $0x28] sm:$0xff] (!%p239_p2)  ;;  %vm303_vm1 = vcmask (!%p239_p2), 31744  }
   0x7   : > { %1218 = vmatpush3.msk.msra.mxu0 (!%p239_p2), %vm352_vm0, %v295_v0  ;;  %v1299_v5 = vpack.c.bf16 (!%p239_p2), %v518_v2, %v517_v1  ;;  %v1303_v6 = vpack.c.bf16 (!%p239_p2), %v520_v4, %v519_v3  ;;  %v521_v7 = vld [vmem:[%s1782_s3 + $0x20] sm:$0xff] (!%p239_p2)  ;;  %v523_v10 = vld [vmem:[%s1782_s3 + $0x30] sm:$0xff] (!%p239_p2)  ;;  %v524_v11 = vld [vmem:[%s1782_s3 + $0x38] sm:$0xff] (!%p239_p2)  ;;  %vm909_vm2 = vcmask (!%p239_p2), 1041409   ;;  %vm911_vm3 = vcmask (!%p239_p2), 1042434   ;;  %p275_p4 = scmp.lt.s32.totalorder (!%p239_p2), %s1441_s25, 1 }
   0x8   : > { %v1307_v9 = vpack.c.bf16 (!%p239_p2), %v522_v8, %v521_v7  ;;  %v1311_v16 = vpack.c.bf16 (!%p239_p2), %v524_v11, %v523_v10  ;;  %v525_v18 = vld [vmem:[%s1782_s3 + $0x40] sm:$0xff] (!%p239_p2)  ;;  %v526_v19 = vld [vmem:[%s1782_s3 + $0x48] sm:$0xff] (!%p239_p2)  ;;  %v527_v23 = vld [vmem:[%s1782_s3 + $0x50] sm:$0xff] (!%p239_p2)  ;;  %vm913_vm4 = vcmask (!%p239_p2), 1043459   ;;  %vm915_vm6 = vcmask (!%p239_p2), 1044484  }
   0x9   : > { %1300 = vmatprep.subr.bf16.mxu1 (!%p239_p2), %v1299_v5  ;;  %v1315_v21 = vpack.c.bf16 (!%p239_p2), %v526_v19, %v525_v18  ;;  %v528_v24 = vld [vmem:[%s1782_s3 + $0x58] sm:$0xff] (!%p239_p2)  ;;  %v529_v28 = vld [vmem:[%s1782_s3 + $0x60] sm:$0xff] (!%p239_p2)  ;;  %v530_v29 = vld [vmem:[%s1782_s3 + $0x68] sm:$0xff] (!%p239_p2)  ;;  %vm917_vm8 = vcmask (!%p239_p2), 1045509   ;;  %vm919_vm13 = vcmask (!%p239_p2), 1046534   ;;  %vm921_vm14 = vcmask (!%p239_p2), 1047559  }
   0xa   : > { %1302 = vmatpush3.bf16.msra.mxu1 (!%p239_p2), %v1299_v5  ;;  %v1319_v26 = vpack.c.bf16 (!%p239_p2), %v528_v24, %v527_v23  ;;  %v1323_v31 = vpack.c.bf16 (!%p239_p2), %v530_v29, %v529_v28  ;;  %v531_v38 = vld [vmem:[%s1782_s3 + $0x70] sm:$0xff] (!%p239_p2)  ;;  %v532_v39 = vld [vmem:[%s1782_s3 + $0x78] sm:$0xff] (!%p239_p2)  ;;  %v1111_v41 = vld [vmem:[%s1781_s2] ss:$0 sm:$0xff] (!%p239_p2) }
   0xb   : > { %1304 = vmatprep.subr.bf16.mxu1 (!%p239_p2), %v1303_v6  ;;  %v1327_v40 = vpack.c.bf16 (!%p239_p2), %v532_v39, %v531_v38  ;;  %v940_v29 = vld [vmem:[%s1784_s5] sm:$0xff] (!%p239_p2)  ;;  %v961_v39 = vld [vmem:[%s1784_s5 + $0xa8] sm:$0xff] (!%p239_p2) }
   0xc   : > { %v960_v38 = vld [vmem:[%s1784_s5 + $0xa0] sm:$0xff] (!%p239_p2) }
   0xd   : > { %s1788_s28 = smov (!%p270_p3, %s1108_s28), 31  ;;  %s1790_s25 = smov (!%p275_p4, %s1441_s25), 1 }
   0xe   : > { %s1109_s18 = sshll.u32 %s1788_s28, 3  ;;  %1306 = vmatpush3.bf16.msra.mxu1 %v1303_v6  ;;  %s1110_s28 = sshll.u32 %s1790_s25, 3 }
   0xf   : > { %s1470_s21 = scalar_lea.vmem %s1779_s0, %s1109_s18  ;;  %1308 = vmatprep.subr.bf16.mxu1 %v1307_v9  ;;  %s278_s10 = scalar_lea.vmem %s1786_s7, %s1110_s28 }
  0x10   : > { %v279_v12 = vld [vmem:[%s1470_s21] sm:$0xff]  ;;  %v280_v13 = vld [vmem:[%s1470_s21 + $0x8] sm:$0xff]  ;;  %v281_v14 = vld [vmem:[%s1470_s21 + $0x10] sm:$0xff] }
  0x11   : > { %1219 = vmatprep.mubr.msk.f32.mxu0 %vm303_vm1, %v279_v12  ;;  %v282_v15 = vld [vmem:[%s1470_s21 + $0x18] sm:$0xff]  ;;  %v283_v17 = vld [vmem:[%s1470_s21 + $0x20] sm:$0xff]  ;;  %v284_v20 = vld [vmem:[%s1470_s21 + $0x28] sm:$0xff] }
  0x12   : > { %1220 = vmatmul.mubr.msk.f32.vlgmr.msra.gmra.mrb[0].mxu0 %vm303_vm1, %v280_v13  ;;  %1310 = vmatpush3.bf16.msra.mxu1 %v1307_v9  ;;  %v285_v22 = vld [vmem:[%s1470_s21 + $0x30] sm:$0xff]  ;;  %v286_v25 = vld [vmem:[%s1470_s21 + $0x38] sm:$0xff]  ;;  %v287_v27 = vld [vmem:[%s1470_s21 + $0x40] sm:$0xff] }
  0x13   : > { %1222 = vmatprep.mubr.msk.f32.mxu0 %vm303_vm1, %v281_v14  ;;  %1312 = vmatprep.subr.bf16.mxu1 %v1311_v16  ;;  %v288_v30 = vld [vmem:[%s1470_s21 + $0x48] sm:$0xff]  ;;  %v289_v32 = vld [vmem:[%s1470_s21 + $0x50] sm:$0xff]  ;;  %v290_v33 = vld [vmem:[%s1470_s21 + $0x58] sm:$0xff] }
  0x14   : > { %v291_v34 = vld [vmem:[%s1470_s21 + $0x60] sm:$0xff]  ;;  %v292_v35 = vld [vmem:[%s1470_s21 + $0x68] sm:$0xff]  ;;  %v293_v36 = vld [vmem:[%s1470_s21 + $0x70] sm:$0xff] }
  0x15   : > { %v294_v37 = vld [vmem:[%s1470_s21 + $0x78] sm:$0xff] }
  0x16   : > { %1223 = vmatmul.mubr.msk.f32.gmra.mrb[2].mxu0 %vm303_vm1, %v282_v15  ;;  %1314 = vmatpush3.bf16.msra.mxu1 %v1311_v16 }
  0x17   : > { %1225 = vmatprep.mubr.msk.f32.mxu0 %vm303_vm1, %v283_v17  ;;  %1316 = vmatprep.subr.bf16.mxu1 %v1315_v21 }
  0x1a   : > { %1226 = vmatmul.mubr.msk.f32.gmra.mrb[4].mxu0 %vm303_vm1, %v284_v20  ;;  %1318 = vmatpush3.bf16.msra.mxu1 %v1315_v21 }
  0x1b   : > { %1228 = vmatprep.mubr.msk.f32.mxu0 %vm303_vm1, %v285_v22  ;;  %1320 = vmatprep.subr.bf16.mxu1 %v1319_v26 }
  0x1e   : > { %1229 = vmatmul.mubr.msk.f32.gmra.mrb[6].mxu0 %vm303_vm1, %v286_v25  ;;  %1322 = vmatpush3.bf16.msra.mxu1 %v1319_v26  ;;  %v956_v26 = vld [vmem:[%s1784_s5 + $0x80] sm:$0xff] }
  0x1f   : > { %1231 = vmatprep.mubr.msk.f32.mxu0 %vm303_vm1, %v287_v27  ;;  %1324 = vmatprep.subr.bf16.mxu1 %v1323_v31  ;;  %v957_v27 = vld [vmem:[%s1784_s5 + $0x88] sm:$0xff] }
  0x20   : > { %v1331_v28 = vpack.c.bf16 %v957_v27, %v956_v26 }
  0x22   : > { %1232 = vmatmul.mubr.msk.f32.gmra.mrb[8].mxu0 %vm303_vm1, %v288_v30  ;;  %1326 = vmatpush3.bf16.msra.mxu1 %v1323_v31  ;;  %v941_v30 = vld [vmem:[%s1784_s5 + $0x8] sm:$0xff] }
  0x23   : > { %1234 = vmatprep.mubr.msk.f32.mxu0 %vm303_vm1, %v289_v32  ;;  %1328 = vmatprep.subr.bf16.mxu1 %v1327_v40  ;;  %v1333_v31 = vpack.c.bf16 %v941_v30, %v940_v29  ;;  %v958_v32 = vld [vmem:[%s1784_s5 + $0x90] sm:$0xff] }
  0x24   : > { %1332 = vmatprep.subr.bf16.mxu0 %v1331_v28 }
  0x25   : > { %1334 = vmatpush3.bf16.msra.mxu0 %v1333_v31 }
  0x26   : > { %1235 = vmatmul.mubr.msk.f32.gmra.mrb[10].mxu0 %vm303_vm1, %v290_v33  ;;  %1330 = vmatpush3.bf16.msra.mxu1 %v1327_v40  ;;  %v959_v33 = vld [vmem:[%s1784_s5 + $0x98] sm:$0xff]  ;;  %v1339_v40 = vpack.c.bf16 %v961_v39, %v960_v38 }
  0x27   : > { %1237 = vmatprep.mubr.msk.f32.mxu0 %vm303_vm1, %v291_v34  ;;  %v1335_v34 = vpack.c.bf16 %v959_v33, %v958_v32 }
  0x29   : > { %1336 = vmatprep.subr.bf16.mxu0 %v1335_v34 }
  0x2a   : > { %1238 = vmatmul.mubr.msk.f32.gmra.mrb[12].mxu0 %vm303_vm1, %v292_v35  ;;  %v942_v35 = vld [vmem:[%s1784_s5 + $0x10] sm:$0xff] }
  0x2b   : > { %1240 = vmatprep.mubr.msk.f32.mxu0 %vm303_vm1, %v293_v36  ;;  %v943_v36 = vld [vmem:[%s1784_s5 + $0x18] sm:$0xff] }
  0x2e   : > { %1241 = vmatmul.mubr.msk.f32.gmra.mrb[14].mxu0 %vm303_vm1, %v294_v37  ;;  %v1337_v37 = vpack.c.bf16 %v943_v36, %v942_v35 }
  0x30   : > { %1338 = vmatpush3.bf16.msra.mxu0 %v1337_v37 }
  0x31   : > { %1340 = vmatprep.subr.bf16.mxu0 %v1339_v40 }
  0xe5   : > { %v1221_v42 = vpop.f32.mrb[0].mxu0 }
  0xe6   : > { %v428_v43 = vadd.f32 %v1221_v42, %v1111_v41  ;;  %v422_v44 = vpop.f32.mrb[1].mxu0  ;;  %v945_v42 = vld [vmem:[%s1784_s5 + $0x28] sm:$0xff] }
  0xe7   : > { %v423_v45 = vadd.f32 %v1111_v41, %v422_v44  ;;  %v962_v44 = vld [vmem:[%s1784_s5 + $0xb0] sm:$0xff] }
  0xe8   : > { %v502_v48 = vmax.f32 %v428_v43, 0.0 }
  0xe9   : > { %v1224_v46 = vpop.f32.mrb[2].mxu0  ;;  %v501_v47 = vmax.f32 %v423_v45, 0.0  ;;  %v963_v45 = vld [vmem:[%s1784_s5 + $0xb8] sm:$0xff] }
  0xea   : > { %v438_v49 = vadd.f32 %v1224_v46, %v1111_v41  ;;  %v432_v50 = vpop.f32.mrb[3].mxu0  ;;  %v1343_v46 = vpack.c.bf16 %v963_v45, %v962_v44 }
  0xeb   : > { %v433_v51 = vadd.f32 %v1111_v41, %v432_v50  ;;  %1275 = vmatprep.mubr.f32.mxu1 %v501_v47  ;;  %v946_v47 = vld [vmem:[%s1784_s5 + $0x30] sm:$0xff]  ;;  %v964_v50 = vld [vmem:[%s1784_s5 + $0xc0] sm:$0xff] }
  0xec   : > { %1276 = vmatmul.mubr.f32.vlgmr.msra.gmra.mrb[0].mxu1 %v502_v48  ;;  %v504_v54 = vmax.f32 %v438_v49, 0.0  ;;  %v947_v48 = vld [vmem:[%s1784_s5 + $0x38] sm:$0xff] }
  0xed   : > { %v503_v52 = vmax.f32 %v433_v51, 0.0  ;;  %v1227_v53 = vpop.f32.mrb[4].mxu0  ;;  %v1345_v49 = vpack.c.bf16 %v947_v48, %v946_v47  ;;  %v965_v51 = vld [vmem:[%s1784_s5 + $0xc8] sm:$0xff] }
  0xee   : > { %v448_v55 = vadd.f32 %v1227_v53, %v1111_v41  ;;  %v442_v56 = vpop.f32.mrb[5].mxu0  ;;  %v1347_v53 = vpack.c.bf16 %v965_v51, %v964_v50 }
  0xef   : > { %v443_v57 = vadd.f32 %v1111_v41, %v442_v56  ;;  %1278 = vmatprep.mubr.f32.mxu1 %v503_v52  ;;  %v948_v52 = vld [vmem:[%s1784_s5 + $0x40] sm:$0xff]  ;;  %v967_v56 = vld [vmem:[%s1784_s5 + $0xd8] sm:$0xff] }
  0xf0   : > { %1279 = vmatmul.mubr.f32.gmra.mrb[2].mxu1 %v504_v54  ;;  %v506_v60 = vmax.f32 %v448_v55, 0.0  ;;  %v949_v54 = vld [vmem:[%s1784_s5 + $0x48] sm:$0xff]  ;;  %v966_v55 = vld [vmem:[%s1784_s5 + $0xd0] sm:$0xff] }
  0xf1   : > { %v505_v58 = vmax.f32 %v443_v57, 0.0  ;;  %v1230_v59 = vpop.f32.mrb[6].mxu0  ;;  %v1349_v57 = vpack.c.bf16 %v949_v54, %v948_v52 }
  0xf2   : > { %v458_v61 = vadd.f32 %v1230_v59, %v1111_v41  ;;  %v452_v62 = vpop.f32.mrb[7].mxu0  ;;  %v950_v59 = vld [vmem:[%s1784_s5 + $0x50] sm:$0xff] }
  0xf3   : > { %v453_v63 = vadd.f32 %v1111_v41, %v452_v62  ;;  %1281 = vmatprep.mubr.f32.mxu1 %v505_v58  ;;  %v1351_v58 = vpack.c.bf16 %v967_v56, %v966_v55  ;;  %v969_v62 = vld [vmem:[%s1784_s5 + $0xe8] sm:$0xff] }
  0xf4   : > { %1282 = vmatmul.mubr.f32.gmra.mrb[4].mxu1 %v506_v60  ;;  %v508_v2 = vmax.f32 %v458_v61, 0.0  ;;  %v951_v60 = vld [vmem:[%s1784_s5 + $0x58] sm:$0xff]  ;;  %v968_v61 = vld [vmem:[%s1784_s5 + $0xe0] sm:$0xff] }
  0xf5   : > { %v507_v0 = vmax.f32 %v453_v63, 0.0  ;;  %v1233_v1 = vpop.f32.mrb[8].mxu0  ;;  %v1353_v63 = vpack.c.bf16 %v951_v60, %v950_v59 }
  0xf6   : > { %v468_v3 = vadd.f32 %v1233_v1, %v1111_v41  ;;  %v462_v4 = vpop.f32.mrb[9].mxu0  ;;  %v952_v1 = vld [vmem:[%s1784_s5 + $0x60] sm:$0xff] }
  0xf7   : > { %v463_v5 = vadd.f32 %v1111_v41, %v462_v4  ;;  %1284 = vmatprep.mubr.f32.mxu1 %v507_v0  ;;  %v1355_v0 = vpack.c.bf16 %v969_v62, %v968_v61  ;;  %v971_v4 = vld [vmem:[%s1784_s5 + $0xf8] sm:$0xff] }
  0xf8   : > { %1285 = vmatmul.mubr.f32.gmra.mrb[6].mxu1 %v508_v2  ;;  %v510_v8 = vmax.f32 %v468_v3, 0.0  ;;  %v953_v2 = vld [vmem:[%s1784_s5 + $0x68] sm:$0xff]  ;;  %v970_v3 = vld [vmem:[%s1784_s5 + $0xf0] sm:$0xff] }
  0xf9   : > { %v509_v6 = vmax.f32 %v463_v5, 0.0  ;;  %v1236_v7 = vpop.f32.mrb[10].mxu0  ;;  %v1357_v5 = vpack.c.bf16 %v953_v2, %v952_v1 }
  0xfa   : > { %v478_v9 = vadd.f32 %v1236_v7, %v1111_v41  ;;  %v472_v10 = vpop.f32.mrb[11].mxu0  ;;  %v954_v7 = vld [vmem:[%s1784_s5 + $0x70] sm:$0xff] }
  0xfb   : > { %v473_v11 = vadd.f32 %v1111_v41, %v472_v10  ;;  %1287 = vmatprep.mubr.f32.mxu1 %v509_v6  ;;  %v1359_v6 = vpack.c.bf16 %v971_v4, %v970_v3  ;;  %v1636_v10 = vld [vmem:[%s1783_s4] ss:$0 sm:$0xff] }
  0xfc   : > { %1288 = vmatmul.mubr.f32.gmra.mrb[8].mxu1 %v510_v8  ;;  %v512_v14 = vmax.f32 %v478_v9, 0.0  ;;  %v955_v8 = vld [vmem:[%s1784_s5 + $0x78] sm:$0xff] }
  0xfd   : > { %v511_v12 = vmax.f32 %v473_v11, 0.0  ;;  %v1239_v13 = vpop.f32.mrb[12].mxu0  ;;  %v1361_v9 = vpack.c.bf16 %v955_v8, %v954_v7 }
  0xfe   : > { %v488_v15 = vadd.f32 %v1239_v13, %v1111_v41  ;;  %v482_v16 = vpop.f32.mrb[13].mxu0 }
  0xff   : > { %v483_v17 = vadd.f32 %v1111_v41, %v482_v16  ;;  %1290 = vmatprep.mubr.f32.mxu1 %v511_v12 }
 0x100   : > { %1291 = vmatmul.mubr.f32.gmra.mrb[10].mxu1 %v512_v14  ;;  %v514_v20 = vmax.f32 %v488_v15, 0.0 }
 0x101   : > { %v513_v18 = vmax.f32 %v483_v17, 0.0  ;;  %v1242_v19 = vpop.f32.mrb[14].mxu0 }
 0x102   : > { %v498_v21 = vadd.f32 %v1242_v19, %v1111_v41  ;;  %v492_v22 = vpop.f32.mrb[15].mxu0 }
 0x103   : > { %v493_v23 = vadd.f32 %v1111_v41, %v492_v22  ;;  %1293 = vmatprep.mubr.f32.mxu1 %v513_v18  ;;  %v944_v41 = vld [vmem:[%s1784_s5 + $0x20] sm:$0xff] }
 0x104   : > { %1294 = vmatmul.mubr.f32.gmra.mrb[12].mxu1 %v514_v20  ;;  %v516_v25 = vmax.f32 %v498_v21, 0.0  ;;  %v1341_v43 = vpack.c.bf16 %v945_v42, %v944_v41 }
 0x105   : > { %v515_v24 = vmax.f32 %v493_v23, 0.0 }
 0x106   : > { %1342 = vmatpush3.bf16.msra.mxu0 %v1341_v43 }
 0x107   : > { %1296 = vmatprep.mubr.f32.mxu1 %v515_v24  ;;  %1344 = vmatprep.subr.bf16.mxu0 %v1343_v46 }
 0x108   : > { %1297 = vmatmul.mubr.f32.gmra.mrb[14].mxu1 %v516_v25 }
 0x10a   : > { %1346 = vmatpush3.bf16.msra.mxu0 %v1345_v49 }
 0x10b   : > { %1348 = vmatprep.subr.bf16.mxu0 %v1347_v53 }
 0x10e   : > { %1350 = vmatpush3.bf16.msra.mxu0 %v1349_v57 }
 0x10f   : > { %1352 = vmatprep.subr.bf16.mxu0 %v1351_v58 }
 0x112   : > { %1354 = vmatpush3.bf16.msra.mxu0 %v1353_v63 }
 0x113   : > { %1356 = vmatprep.subr.bf16.mxu0 %v1355_v0 }
 0x116   : > { %1358 = vmatpush3.bf16.msra.mxu0 %v1357_v5 }
 0x117   : > { %1360 = vmatprep.subr.bf16.mxu0 %v1359_v6 }
 0x11a   : > { %1362 = vmatpush3.bf16.msra.mxu0 %v1361_v9 }
 0x1bf   : > { %v1277_v11 = vpop.f32.mrb[0].mxu1 }
 0x1c0   : > { %v612_v12 = vadd.f32 %v1277_v11, %v1636_v10  ;;  %v606_v13 = vpop.f32.mrb[1].mxu1 }
 0x1c1   : > { %v607_v14 = vadd.f32 %v1636_v10, %v606_v13 }
 0x1c3   : > { %v685_v15 = vadd.f32 %v612_v12, %v607_v14  ;;  %v1280_v16 = vpop.f32.mrb[2].mxu1 }
 0x1c4   : > { %v622_v17 = vadd.f32 %v1280_v16, %v1636_v10  ;;  %v616_v18 = vpop.f32.mrb[3].mxu1 }
 0x1c5   : > { %v686_v19 = vrot.slane %v685_v15, 4  ;;  %v617_v20 = vadd.f32 %v1636_v10, %v616_v18 }
 0x1c7   : > { %v687_v21 = vadd.f32 %v686_v19, %v685_v15  ;;  %v692_v22 = vadd.f32 %v622_v17, %v617_v20  ;;  %v1283_v23 = vpop.f32.mrb[4].mxu1 }
 0x1c8   : > { %v1643_v24 = vadd.f32 %v1283_v23, %v1636_v10  ;;  %v626_v25 = vpop.f32.mrb[5].mxu1 }
 0x1c9   : > { %v688_v26 = vrot.slane %v687_v21, 2  ;;  %v693_v27 = vrot.slane %v692_v22, 4  ;;  %v1646_v28 = vadd.f32 %v1636_v10, %v626_v25 }
 0x1cb   : > { %v689_v29 = vadd.f32 %v688_v26, %v687_v21  ;;  %v694_v30 = vadd.f32 %v693_v27, %v692_v22  ;;  %v699_v31 = vadd.f32 %v1643_v24, %v1646_v28  ;;  %v1286_v32 = vpop.f32.mrb[6].mxu1 }
 0x1cc   : > { %v1651_v33 = vadd.f32 %v1286_v32, %v1636_v10  ;;  %v636_v34 = vpop.f32.mrb[7].mxu1 }
 0x1cd   : > { %v690_v35 = vrot.slane %v689_v29, 1  ;;  %v695_v36 = vrot.slane %v694_v30, 2  ;;  %v700_v37 = vrot.slane %v699_v31, 4  ;;  %v1654_v38 = vadd.f32 %v1636_v10, %v636_v34 }
 0x1cf   : > { %v691_v39 = vadd.f32 %v690_v35, %v689_v29  ;;  %v696_v40 = vadd.f32 %v695_v36, %v694_v30  ;;  %v701_v41 = vadd.f32 %v700_v37, %v699_v31  ;;  %v706_v42 = vadd.f32 %v1651_v33, %v1654_v38  ;;  %v1289_v43 = vpop.f32.mrb[8].mxu1 }
 0x1d0   : > { %v1659_v44 = vadd.f32 %v1289_v43, %v1636_v10  ;;  %v646_v45 = vpop.f32.mrb[9].mxu1 }
 0x1d1   : > { %v741_v46 = vmul.f32 0.0625, %v691_v39  ;;  %v697_v47 = vrot.slane %v696_v40, 1  ;;  %v702_v48 = vrot.slane %v701_v41, 2  ;;  %v707_v49 = vrot.slane %v706_v42, 4 }
 0x1d2   : > { %v1662_v50 = vadd.f32 %v1636_v10, %v646_v45 }
 0x1d3   : > { %v749_v51 = vsub.f32 %v607_v14, %v741_v46  ;;  %v750_v52 = vsub.f32 %v612_v12, %v741_v46  ;;  %v698_v53 = vadd.f32 %v697_v47, %v696_v40  ;;  %v703_v54 = vadd.f32 %v702_v48, %v701_v41  ;;  %v1292_v55 = vpop.f32.mrb[10].mxu1 }
 0x1d4   : > { %v708_v56 = vadd.f32 %v707_v49, %v706_v42  ;;  %v713_v57 = vadd.f32 %v1659_v44, %v1662_v50  ;;  %v1667_v58 = vadd.f32 %v1292_v55, %v1636_v10  ;;  %v656_v59 = vpop.f32.mrb[11].mxu1 }
 0x1d5   : > { %v765_v60 = vmul.f32 %v749_v51, %v749_v51  ;;  %v766_v61 = vmul.f32 %v750_v52, %v750_v52  ;;  %v742_v62 = vmul.f32 0.0625, %v698_v53  ;;  %v704_v63 = vrot.slane %v703_v54, 1 }
 0x1d6   : > { %v709_v0 = vrot.slane %v708_v56, 2  ;;  %v714_v1 = vrot.slane %v713_v57, 4  ;;  %v1670_v2 = vadd.f32 %v1636_v10, %v656_v59 }
 0x1d7   : > { %v781_v3 = vadd.f32 %v766_v61, %v765_v60  ;;  %v751_v4 = vsub.f32 %v617_v20, %v742_v62  ;;  %v752_v5 = vsub.f32 %v622_v17, %v742_v62  ;;  %v910_v6 = vsel %vm909_vm2, %v742_v62, %v741_v46  ;;  %v1295_v7 = vpop.f32.mrb[12].mxu1 }
 0x1d8   : > { %v705_v8 = vadd.f32 %v704_v63, %v703_v54  ;;  %v710_v9 = vadd.f32 %v709_v0, %v708_v56  ;;  %v715_v11 = vadd.f32 %v714_v1, %v713_v57  ;;  %v720_v12 = vadd.f32 %v1667_v58, %v1670_v2  ;;  %v666_v13 = vpop.f32.mrb[13].mxu1 }
 0x1d9   : > { %v782_v14 = vrot.slane %v781_v3, 4  ;;  %v767_v15 = vmul.f32 %v751_v4, %v751_v4  ;;  %v768_v16 = vmul.f32 %v752_v5, %v752_v5  ;;  %v1676_v18 = vadd.f32 %v1295_v7, %v1636_v10 }
 0x1da   : > { %v743_v19 = vmul.f32 0.0625, %v705_v8  ;;  %v711_v21 = vrot.slane %v710_v9, 1  ;;  %v716_v20 = vrot.slane %v715_v11, 2  ;;  %v721_v17 = vrot.slane %v720_v12, 4 }
 0x1db   : > { %v783_v22 = vadd.f32 %v782_v14, %v781_v3  ;;  %v788_v23 = vadd.f32 %v768_v16, %v767_v15  ;;  %v1679_v25 = vadd.f32 %v1636_v10, %v666_v13  ;;  %v1298_v26 = vpop.f32.mrb[14].mxu1 }
 0x1dc   : > { %v753_v27 = vsub.f32 %v1646_v28, %v743_v19  ;;  %v754_v29 = vsub.f32 %v1643_v24, %v743_v19  ;;  %v912_v30 = vsel %vm911_vm3, %v743_v19, %v910_v6  ;;  %v712_v31 = vadd.f32 %v711_v21, %v710_v9  ;;  %v676_v32 = vpop.f32.mrb[15].mxu1 }
 0x1dd   : > { %v784_v34 = vrot.slane %v783_v22, 2  ;;  %v789_v35 = vrot.slane %v788_v23, 4  ;;  %v717_v36 = vadd.f32 %v716_v20, %v715_v11  ;;  %v722_v37 = vadd.f32 %v721_v17, %v720_v12 }
 0x1de   : > { %v769_v39 = vmul.f32 %v753_v27, %v753_v27  ;;  %v770_v40 = vmul.f32 %v754_v29, %v754_v29  ;;  %v744_v41 = vmul.f32 0.0625, %v712_v31  ;;  %v727_v42 = vadd.f32 %v1676_v18, %v1679_v25 }
 0x1df   : > { %v785_v43 = vadd.f32 %v784_v34, %v783_v22  ;;  %v790_v45 = vadd.f32 %v789_v35, %v788_v23  ;;  %v718_v46 = vrot.slane %v717_v36, 1  ;;  %v723_v28 = vrot.slane %v722_v37, 2 }
 0x1e0   : > { %v795_v47 = vadd.f32 %v770_v40, %v769_v39  ;;  %v755_v24 = vsub.f32 %v1654_v38, %v744_v41  ;;  %v756_v48 = vsub.f32 %v1651_v33, %v744_v41  ;;  %v1689_v49 = vsel %vm913_vm4, %v744_v41, %v912_v30 }
 0x1e1   : > { %v786_v51 = vrot.slane %v785_v43, 1  ;;  %v791_v52 = vrot.slane %v790_v45, 2  ;;  %v719_v53 = vadd.f32 %v718_v46, %v717_v36  ;;  %v724_v54 = vadd.f32 %v723_v28, %v722_v37 }
 0x1e2   : > { %v796_v55 = vrot.slane %v795_v47, 4  ;;  %v771_v56 = vmul.f32 %v755_v24, %v755_v24  ;;  %v772_v57 = vmul.f32 %v756_v48, %v756_v48  ;;  %v728_v59 = vrot.slane %v727_v42, 4 }
 0x1e3   : > { %v787_v60 = vadd.f32 %v786_v51, %v785_v43  ;;  %v792_v61 = vadd.f32 %v791_v52, %v790_v45  ;;  %v1691_v62 = vmul.f32 0.0625, %v719_v53  ;;  %v725_v63 = vrot.slane %v724_v54, 1 }
 0x1e4   : > { %v797_v0 = vadd.f32 %v796_v55, %v795_v47  ;;  %v802_v38 = vadd.f32 %v772_v57, %v771_v56  ;;  %v729_v1 = vadd.f32 %v728_v59, %v727_v42  ;;  %v1694_v33 = vadd.f32 %v1298_v26, %v1636_v10 }
 0x1e5   : > { %v1696_v3 = vmul.f32 0.06666667, %v787_v60  ;;  %v793_v4 = vrot.slane %v792_v61, 1  ;;  %v757_v5 = vsub.f32 %v1662_v50, %v1691_v62  ;;  %v758_v6 = vsub.f32 %v1659_v44, %v1691_v62 }
 0x1e6   : > { %v798_v7 = vrot.slane %v797_v0, 2  ;;  %v803_v8 = vrot.slane %v802_v38, 4  ;;  %v726_v9 = vadd.f32 %v725_v63, %v724_v54  ;;  %v730_v11 = vrot.slane %v729_v1, 2 }
 0x1e7   : > { %1371 = vrsqrt.f32 %v1696_v3  ;;  %v794_v12 = vadd.f32 %v793_v4, %v792_v61  ;;  %v773_v13 = vmul.f32 %v757_v5, %v757_v5  ;;  %v774_v14 = vmul.f32 %v758_v6, %v758_v6 }
 0x1e8   : > { %v799_v15 = vadd.f32 %v798_v7, %v797_v0  ;;  %v804_v16 = vadd.f32 %v803_v8, %v802_v38  ;;  %v1703_v19 = vmul.f32 0.0625, %v726_v9  ;;  %v731_v21 = vadd.f32 %v730_v11, %v729_v1 }
 0x1e9   : > { %v1705_v20 = vmul.f32 0.06666667, %v794_v12  ;;  %v809_v50 = vadd.f32 %v774_v14, %v773_v13  ;;  %v1708_v17 = vadd.f32 %v1636_v10, %v676_v32  ;;  %vm847_vm5 = vcmp.eq.f32.partialorder %v1696_v3, inf }
 0x1ea   : > { %v800_v44 = vrot.slane %v799_v15, 1  ;;  %v805_v22 = vrot.slane %v804_v16, 2  ;;  %v759_v23 = vsub.f32 %v1670_v2, %v1703_v19  ;;  %v760_v26 = vsub.f32 %v1667_v58, %v1703_v19 }
 0x1eb   : > { %1373 = vrsqrt.f32 %v1705_v20  ;;  %v810_v27 = vrot.slane %v809_v50, 4  ;;  %v732_v29 = vrot.slane %v731_v21, 1  ;;  %v734_v30 = vadd.f32 %v1694_v33, %v1708_v17 }
 0x1ec   : > { %v801_v31 = vadd.f32 %v800_v44, %v799_v15  ;;  %v806_v34 = vadd.f32 %v805_v22, %v804_v16  ;;  %v775_v35 = vmul.f32 %v759_v23, %v759_v23  ;;  %v776_v10 = vmul.f32 %v760_v26, %v760_v26 }
 0x1ed   : > { %v811_v32 = vadd.f32 %v810_v27, %v809_v50  ;;  %v733_v36 = vadd.f32 %v732_v29, %v731_v21  ;;  %v735_v37 = vrot.slane %v734_v30, 4  ;;  %vm849_vm7 = vcmp.eq.f32.partialorder %v1696_v3, 0.0 }
 0x1ee   : > { %v1717_v39 = vmul.f32 0.06666667, %v801_v31  ;;  %v807_v2 = vrot.slane %v806_v34, 1  ;;  %v816_v40 = vadd.f32 %v776_v10, %v775_v35  ;;  %vm854_vm9 = vcmp.eq.f32.partialorder %v1705_v20, inf }
 0x1ef   : > { %v812_v41 = vrot.slane %v811_v32, 2  ;;  %v1719_v58 = vmul.f32 0.0625, %v733_v36  ;;  %v736_v42 = vadd.f32 %v735_v37, %v734_v30  ;;  %v857_v38 = vand.u32 2147483648, %v1705_v20 }
 0x1f0   : > { %1375 = vrsqrt.f32 %v1717_v39  ;;  %v808_v43 = vadd.f32 %v807_v2, %v806_v34  ;;  %v817_v45 = vrot.slane %v816_v40, 4  ;;  %v850_v8 = vand.u32 2147483648, %v1696_v3 }
 0x1f1   : > { %v1372_v46 = vpop.eup %1371  ;;  %v813_v28 = vadd.f32 %v812_v41, %v811_v32  ;;  %v761_v47 = vsub.f32 %v1679_v25, %v1719_v58  ;;  %v762_v24 = vsub.f32 %v1676_v18, %v1719_v58  ;;  %v737_v48 = vrot.slane %v736_v42, 2 }
 0x1f2   : > { %v1726_v51 = vmul.f32 0.06666667, %v808_v43  ;;  %v818_v52 = vadd.f32 %v817_v45, %v816_v40  ;;  %v846_v53 = vmul.f32 %v1372_v46, %v1696_v3  ;;  %vm856_vm10 = vcmp.eq.f32.partialorder %v1705_v20, 0.0 }
 0x1f3   : > { %v814_v54 = vrot.slane %v813_v28, 1  ;;  %v777_v55 = vmul.f32 %v761_v47, %v761_v47  ;;  %v778_v56 = vmul.f32 %v762_v24, %v762_v24  ;;  %v738_v57 = vadd.f32 %v737_v48, %v736_v42 }
 0x1f4   : > { %1377 = vrsqrt.f32 %v1726_v51  ;;  %v819_v59 = vrot.slane %v818_v52, 2  ;;  %v848_v6 = vsel %vm847_vm5, %v1696_v3, %v846_v53  ;;  %vm861_vm11 = vcmp.eq.f32.partialorder %v1717_v39, inf }
 0x1f5   : > { %v1374_v25 = vpop.eup %1373  ;;  %v815_v60 = vadd.f32 %v814_v54, %v813_v28  ;;  %v823_v61 = vadd.f32 %v778_v56, %v777_v55  ;;  %v739_v18 = vrot.slane %v738_v57, 1  ;;  %v851_v16 = vsel %vm849_vm7, %v850_v8, %v848_v6 }
 0x1f6   : > { %v820_v63 = vadd.f32 %v819_v59, %v818_v52  ;;  %v853_v0 = vmul.f32 %v1374_v25, %v1705_v20  ;;  %vm863_vm12 = vcmp.eq.f32.partialorder %v1717_v39, 0.0  ;;  %v864_v23 = vand.u32 2147483648, %v1717_v39 }
 0x1f7   : > { %v841_v1 = vmul.f32 0.06666667, %v815_v60  ;;  %v824_v4 = vrot.slane %v823_v61, 4  ;;  %v740_v5 = vadd.f32 %v739_v18, %v738_v57  ;;  %v916_v3 = vsel %vm915_vm6, %v1691_v62, %v1689_v49 }
 0x1f8   : > { %v821_v7 = vrot.slane %v820_v63, 1  ;;  %v855_v9 = vsel %vm854_vm9, %v1705_v20, %v853_v0  ;;  %vm868_vm15 = vcmp.eq.f32.partialorder %v1726_v51, inf  ;;  %vm870_vm0 = vcmp.eq.f32.partialorder %v1726_v51, 0.0 }
 0x1f9   : > { %v825_v11 = vadd.f32 %v824_v4, %v823_v61  ;;  %v748_v12 = vmul.f32 0.0625, %v740_v5  ;;  %v858_v13 = vsel %vm856_vm10, %v857_v38, %v855_v9  ;;  %1379 = vrsqrt.f32 %v841_v1 }
 0x1fa   : > { %v1376_v14 = vpop.eup %1375  ;;  %v822_v15 = vadd.f32 %v821_v7, %v820_v63  ;;  %v932_v26 = vsel %vm909_vm2, %v858_v13, %v851_v16  ;;  %v871_v49 = vand.u32 2147483648, %v1726_v51  ;;  %v918_v32 = vsel %vm917_vm8, %v1703_v19, %v916_v3 }
 0x1fb   : > { %v826_v21 = vrot.slane %v825_v11, 2  ;;  %v763_v50 = vsub.f32 %v1708_v17, %v748_v12  ;;  %v764_v44 = vsub.f32 %v1694_v33, %v748_v12  ;;  %v860_v20 = vmul.f32 %v1376_v14, %v1717_v39 }
 0x1fc   : > { %v842_v22 = vmul.f32 0.06666667, %v822_v15  ;;  %v920_v2 = vsel %vm919_vm13, %v1719_v58, %v918_v32  ;;  %vm875_vm1 = vcmp.eq.f32.partialorder %v841_v1, inf  ;;  %v878_v24 = vand.u32 2147483648, %v841_v1 }
 0x1fd   : > { %v827_v27 = vadd.f32 %v826_v21, %v825_v11  ;;  %v779_v29 = vmul.f32 %v763_v50, %v763_v50  ;;  %v780_v30 = vmul.f32 %v764_v44, %v764_v44  ;;  %v862_v31 = vsel %vm861_vm11, %v1717_v39, %v860_v20 }
 0x1fe   : > { %v1378_v34 = vpop.eup %1377  ;;  %v865_v17 = vsel %vm863_vm12, %v864_v23, %v862_v31  ;;  %1381 = vrsqrt.f32 %v842_v22  ;;  %v922_v41 = vsel %vm921_vm14, %v748_v12, %v920_v2  ;;  %vm877_vm2 = vcmp.eq.f32.partialorder %v841_v1, 0.0  ;;  %v1130_v12 = vld [vmem:[%s1785_s6] ss:$0 sm:$0xff] }
 0x1ff   : > { %v828_v33 = vrot.slane %v827_v27, 1  ;;  %v830_v35 = vadd.f32 %v780_v30, %v779_v29  ;;  %v867_v10 = vmul.f32 %v1378_v34, %v1726_v51  ;;  %v933_v62 = vsel %vm911_vm3, %v865_v17, %v932_v26 }
 0x200   : > { %vm882_vm3 = vcmp.eq.f32.partialorder %v842_v22, inf  ;;  %v885_v55 = vand.u32 2147483648, %v842_v22  ;;  %vm884_vm5 = vcmp.eq.f32.partialorder %v842_v22, 0.0 }
 0x201   : > { %v829_v36 = vadd.f32 %v828_v33, %v827_v27  ;;  %v831_v37 = vrot.slane %v830_v35, 4  ;;  %v869_v39 = vsel %vm868_vm15, %v1726_v51, %v867_v10 }
 0x202   : > { %v872_v40 = vsel %vm870_vm0, %v871_v49, %v869_v39 }
 0x203   : > { %v1380_v42 = vpop.eup %1379  ;;  %v843_v43 = vmul.f32 0.06666667, %v829_v36  ;;  %v832_v45 = vadd.f32 %v831_v37, %v830_v35  ;;  %v934_v46 = vsel %vm913_vm4, %v872_v40, %v933_v62 }
 0x204   : > { %v874_v28 = vmul.f32 %v1380_v42, %v841_v1 }
 0x205   : > { %v833_v47 = vrot.slane %v832_v45, 2  ;;  %1383 = vrsqrt.f32 %v843_v43  ;;  %vm889_vm4 = vcmp.eq.f32.partialorder %v843_v43, inf  ;;  %v892_v63 = vand.u32 2147483648, %v843_v43 }
 0x206   : > { %v876_v19 = vsel %vm875_vm1, %v841_v1, %v874_v28 }
 0x207   : > { %v834_v48 = vadd.f32 %v833_v47, %v832_v45  ;;  %v879_v51 = vsel %vm877_vm2, %v878_v24, %v876_v19 }
 0x208   : > { %v1382_v52 = vpop.eup %1381  ;;  %v935_v58 = vsel %vm915_vm6, %v879_v51, %v934_v46  ;;  %vm891_vm6 = vcmp.eq.f32.partialorder %v843_v43, 0.0 }
 0x209   : > { %v835_v53 = vrot.slane %v834_v48, 1  ;;  %v881_v54 = vmul.f32 %v1382_v52, %v842_v22 }
 0x20b   : > { %v836_v56 = vadd.f32 %v835_v53, %v834_v48  ;;  %v883_v57 = vsel %vm882_vm3, %v842_v22, %v881_v54 }
 0x20c   : > { %v886_v59 = vsel %vm884_vm5, %v885_v55, %v883_v57 }
 0x20d   : > { %v844_v25 = vmul.f32 0.06666667, %v836_v56  ;;  %v936_v60 = vsel %vm917_vm8, %v886_v59, %v935_v58 }
 0x20f   : > { %v1384_v61 = vpop.eup %1383  ;;  %1385 = vrsqrt.f32 %v844_v25  ;;  %vm896_vm7 = vcmp.eq.f32.partialorder %v844_v25, inf  ;;  %v899_v6 = vand.u32 2147483648, %v844_v25  ;;  %vm898_vm9 = vcmp.eq.f32.partialorder %v844_v25, 0.0 }
 0x210   : > { %v888_v18 = vmul.f32 %v1384_v61, %v843_v43 }
 0x212   : > { %v890_v0 = vsel %vm889_vm4, %v843_v43, %v888_v18 }
 0x213   : > { %v893_v38 = vsel %vm891_vm6, %v892_v63, %v890_v0 }
 0x214   : > { %v937_v1 = vsel %vm919_vm13, %v893_v38, %v936_v60 }
 0x219   : > { %v1386_v4 = vpop.eup %1385 }
 0x21a   : > { %v895_v5 = vmul.f32 %v1386_v4, %v844_v25 }
 0x21c   : > { %v897_v7 = vsel %vm896_vm7, %v844_v25, %v895_v5 }
 0x21d   : > { %v900_v8 = vsel %vm898_vm9, %v899_v6, %v897_v7 }
 0x21e   : > { %v938_v9 = vsel %vm921_vm14, %v900_v8, %v937_v1 }
 0x21f   : > { %1043 = vmatprep.mubr.f32.mxu0 %v938_v9 }
 0x220   : > { %1044 = vmatmul.mubr.f32.vlgmr.msra.gmra.mrb[16].mxu0 %v922_v41 }
 0x2f3   : > { %v1214_v11 = vpop.f32.mrb[16].mxu0 }
 0x2f4   : > { %v1215_v13 = vpop.f32.mrb[17].mxu0 }
 0x2f5   : > { %v1216_v14 = vadd.f32 %v1215_v13, %v1214_v11 }
 0x2f7   : > { %v1046_v15 = vadd.f32 %v1216_v14, %v1130_v12 }
 0x2f9   : > { %1049 = vst [vmem:[%s278_s10] sm:$0xff] %v1046_v15 }
 0x2fa PF: > { %s17_s24 = sadd.s32 1, %s1393_s24  }
 0x2fb   : > { %p14_p5 = scmp.ge.s32.totalorder %s17_s24, 4  }
 0x2fd   :  { %16 = sbr.rel (!%p14_p5) target bundleno = 1 (0x1), region = 78 }

</bundles_post_ra>
